<compile_context>
chip_gen: v5e
topology: v5e:2x2
jax: 0.10.0
libtpu: 0.0.40
codegen_flags: <defaults>
</compile_context>

<pallas_src>
import math

import jax
import jax.numpy as jnp
import numpy as np
from jax.experimental import pallas as pl
from jax.experimental.pallas import tpu as pltpu


def _round_up(x, m):
    return ((x + m - 1) // m) * m


def _soft_clamp(x, low, high):
    x = jnp.tanh(x)
    return low + 0.5 * (high - low) * (x + 1.0)


def _vmem_capacity_bytes():
    """Trace-time VMEM capacity query; conservative 64 MiB (v7x) fallback."""
    try:
        return int(pltpu.get_tpu_info().vmem_capacity_bytes)
    except Exception:
        return 64 * 1024 * 1024


def _make_kernel(num_layers, action_dim, mu_bounds, log_std_bounds):
    """Kernel signature: kernel(s_ref, w0, b0, w1, b1, ..., out_ref).

    out_ref is a (TB, out_pad) bf16 lane-dense tile; cols [0, action_dim) hold mu,
    cols [action_dim, 2*action_dim) hold std, the rest is padding.
    """
    mu_lo, mu_hi = mu_bounds
    ls_lo, ls_hi = log_std_bounds

    def kernel(*refs):
        s_ref = refs[0]
        out_ref = refs[-1]

        x = s_ref[...]                       # bf16 activations straight to the MXU
        idx = 1
        for layer in range(num_layers):
            w = refs[idx][...]               # bf16 weights (VMEM-resident, 1-buffered)
            b = refs[idx + 1][...]           # f32 bias
            idx += 2
            # bf16 feed to the MXU, f32 accumulate, f32 bias add.
            x = jnp.dot(x, w, preferred_element_type=jnp.float32) + b
            if layer < num_layers - 1:
                # ReLU in f32, hand bf16 back to the next matmul.
                x = jnp.maximum(x, 0.0).astype(jnp.bfloat16)

        # Single lane-dense epilogue: tanh once (f32, v5e-safe), per-column select
        # of the two soft_clamp affines, one unmasked full-width bf16 store.
        t = jnp.tanh(x)
        mu_val = mu_lo + 0.5 * (mu_hi - mu_lo) * (t + 1.0)
        std_val = jnp.exp(ls_lo + 0.5 * (ls_hi - ls_lo) * (t + 1.0))
        col = jax.lax.broadcasted_iota(jnp.int32, x.shape, dimension=1)
        out_ref[...] = jnp.where(col < action_dim, mu_val, std_val).astype(out_ref.dtype)

    return kernel


def _pick_batch_tile(B, requested, const_bytes, per_row_bytes, vmem_budget):
    align = 16  # bf16 packs 2 rows per sublane -> keep tiles 16-row aligned
    cap = _round_up(max(B, 1), align)
    if B > align:
        # Prefer a grid of >= 2 steps so the "parallel" axis can split across
        # both v7x TensorCores (neutral on single-TC v5e/v6e).
        cap = min(cap, _round_up((B + 1) // 2, align))
    tb = _round_up(requested if requested else 512, align)
    tb = max(align, min(tb, cap))
    # Shrink until resident weights + streams + intermediates fit the VMEM budget.
    while tb > align and const_bytes + tb * per_row_bytes > vmem_budget:
        tb = max(align, _round_up(tb // 2, align))
    return tb


def gauss_mlp_forward(s_nchw, params, action_dim, *, batch_tile=None):
    """params: list of (W, b) with W shaped (in, out), b shaped (1, out).

    Returns (mu, std), each (B, action_dim) float32.
    """
    B = s_nchw.shape[0]
    # torch.flatten(s, start_dim=1); bf16 halves the streamed input DMA.
    s_flat = s_nchw.reshape(B, -1).astype(jnp.bfloat16)
    state_dim = s_flat.shape[1]

    num_layers = len(params)
    out_dim = 2 * action_dim

    # Zero-pad every layer's output width (and the next layer's input rows) to a
    # multiple of 128 so all activations / stores are lane-dense.
    padded_params = []
    prev_out_pad = state_dim
    for li, (w, b) in enumerate(params):
        in_dim, o_dim = w.shape
        in_pad = state_dim if li == 0 else prev_out_pad
        o_pad = _round_up(o_dim, 128)
        if (in_pad, o_pad) != (in_dim, o_dim):
            w = jnp.pad(w, ((0, in_pad - in_dim), (0, o_pad - o_dim)))
            b = jnp.pad(b, ((0, 0), (0, o_pad - o_dim)))
        padded_params.append((w.astype(jnp.bfloat16),   # bf16 weights -> MXU, half DMA
                              b.astype(jnp.float32)))   # f32 bias for f32 epilogue
        prev_out_pad = o_pad
    out_pad = prev_out_pad                              # >= round_up(2*action_dim, 128)

    # --- VMEM budgeting (v5e/v6e: 128 MiB, v7x: 64 MiB per TC) ---
    capacity = _vmem_capacity_bytes()
    vmem_limit = max(32 * 1024 * 1024, (capacity * 3) // 4)
    budget = vmem_limit - 4 * 1024 * 1024               # headroom for compiler scratch

    const_bytes = sum(int(w.size) * w.dtype.itemsize + int(b.size) * b.dtype.itemsize
                      for w, b in padded_params)
    max_width = max([state_dim, out_pad] + [int(w.shape[1]) for w, _ in padded_params])
    # Double-buffered bf16 input/output streams + ~3 live f32 rows of intermediates.
    per_row_bytes = 2 * 2 * state_dim + 2 * 2 * out_pad + 3 * 4 * max_width

    TB = _pick_batch_tile(B, batch_tile, const_bytes, per_row_bytes, budget)
    B_pad = _round_up(B, TB)
    if B_pad != B:
        s_flat = jnp.pad(s_flat, ((0, B_pad - B), (0, 0)))

    flat_args = [s_flat]
    for w, b in padded_params:
        flat_args.append(w)
        flat_args.append(b)

    kernel = _make_kernel(num_layers, action_dim,
                          mu_bounds=(-1.0, 1.0), log_std_bounds=(-5.0, 0.0))

    out_specs = pl.BlockSpec((TB, out_pad), lambda i: (i, 0))
    out_shape = jax.ShapeDtypeStruct((B_pad, out_pad), jnp.bfloat16)  # bf16 writeback

    # Advisory cost estimate for XLA scheduling (padded shapes).
    flops = 2 * B_pad * sum(int(w.shape[0]) * int(w.shape[1]) for w, _ in padded_params)
    transcendentals = 2 * B_pad * out_pad  # tanh + exp on the output tile
    bytes_accessed = (sum(int(a.size) * a.dtype.itemsize for a in flat_args)
                      + B_pad * out_pad * 2)
    cost = pl.CostEstimate(flops=flops, transcendentals=transcendentals,
                           bytes_accessed=bytes_accessed)

    def _run(single_buffer_consts):
        in_specs = [pl.BlockSpec((TB, state_dim), lambda i: (i, 0))]
        for w, b in padded_params:
            if single_buffer_consts:
                # Constant index_map -> one resident copy, not double-buffered.
                in_specs.append(pl.BlockSpec(w.shape, lambda i: (0, 0),
                                             pipeline_mode=pl.Buffered(1)))
                in_specs.append(pl.BlockSpec(b.shape, lambda i: (0, 0),
                                             pipeline_mode=pl.Buffered(1)))
            else:
                in_specs.append(pl.BlockSpec(w.shape, lambda i: (0, 0)))
                in_specs.append(pl.BlockSpec(b.shape, lambda i: (0, 0)))
        call = pl.pallas_call(
            kernel,
            out_shape=out_shape,
            grid=(B_pad // TB,),
            in_specs=in_specs,
            out_specs=out_specs,
            compiler_params=pltpu.CompilerParams(
                dimension_semantics=("parallel",),   # megacore sharding on v7x
                vmem_limit_bytes=vmem_limit,
            ),
            cost_estimate=cost,
        )
        return call(*flat_args)

    try:
        out = _run(True)
    except Exception:
        # Fallback: default double-buffering if the single-buffer hint is rejected.
        out = _run(False)

    mu = out[:B, :action_dim].astype(jnp.float32)
    std = out[:B, action_dim:out_dim].astype(jnp.float32)
    return mu, std


def init_mlp_params(key, state_dim, action_dim, width, depth):
    """Deterministic init mimicking PyTorch nn.Linear default (U(-1/sqrt(fan_in), ...))."""
    dims = [state_dim] + [width] * depth + [2 * action_dim]
    params = []
    for i in range(len(dims) - 1):
        fan_in, fan_out = dims[i], dims[i + 1]
        key, kw, kb = jax.random.split(key, 3)
        bound = 1.0 / math.sqrt(fan_in)
        w = jax.random.uniform(kw, (fan_in, fan_out), jnp.float32, -bound, bound)
        b = jax.random.uniform(kb, (1, fan_out), jnp.float32, -bound, bound)
        params.append((w, b))
    return params


def reference_forward(s_nchw, params, action_dim):
    """Pure-JAX reference mirroring the kernel's bf16-matmul / f32-epilogue math."""
    x = s_nchw.reshape(s_nchw.shape[0], -1).astype(jnp.bfloat16)
    for i, (w, b) in enumerate(params):
        x = jnp.dot(x, w.astype(jnp.bfloat16),
                    preferred_element_type=jnp.float32) + b
        if i < len(params) - 1:
            x = jnp.maximum(x, 0.0).astype(jnp.bfloat16)
    mu, log_std = x[:, :action_dim], x[:, action_dim:]
    mu = _soft_clamp(mu, -1.0, 1.0)
    log_std = _soft_clamp(log_std, -5.0, 0.0)
    return mu, jnp.exp(log_std)


if __name__ == "__main__":
    # Small shapes: batch=2, channels=4, spatial=4x4  => state_dim = 64
    B, C, H, W = 2, 4, 4, 4
    state_dim = C * H * W
    action_dim = 4
    width = 32
    depth = 2

    key = jax.random.PRNGKey(0)
    key, k_in = jax.random.split(key)
    s = jax.random.normal(k_in, (B, C, H, W), jnp.float32)

    params = init_mlp_params(key, state_dim, action_dim, width, depth)

    mu, std = gauss_mlp_forward(s, params, action_dim)
    jax.block_until_ready((mu, std))

    mu_ref, std_ref = reference_forward(s, params, action_dim)
    assert mu.shape == (B, action_dim) and std.shape == (B, action_dim)
    assert np.allclose(np.asarray(mu), np.asarray(mu_ref), atol=5e-3, rtol=5e-3)
    assert np.allclose(np.asarray(std), np.asarray(std_ref), atol=5e-3, rtol=5e-3)
    assert np.all(np.asarray(mu) >= -1.0) and np.all(np.asarray(mu) <= 1.0)
    assert np.all(np.asarray(std) > 0.0) and np.all(np.asarray(std) <= 1.0)

    print("KERNEL_OK")
</pallas_src>

<mosaic_0001>
module attributes {stable_mosaic.version = 11 : i64} {
  func.func @kernel(%arg0: i32, %arg1: memref<16x64xbf16, #tpu.memory_space<vmem>>, %arg2: memref<64x128xbf16, #tpu.memory_space<vmem>>, %arg3: memref<1x128xf32, #tpu.memory_space<vmem>>, %arg4: memref<128x128xbf16, #tpu.memory_space<vmem>>, %arg5: memref<1x128xf32, #tpu.memory_space<vmem>>, %arg6: memref<128x128xbf16, #tpu.memory_space<vmem>>, %arg7: memref<1x128xf32, #tpu.memory_space<vmem>>, %arg8: memref<16x128xbf16, #tpu.memory_space<vmem>>) attributes {dimension_semantics = [#tpu.dimension_semantics<parallel>], iteration_bounds = array<i64: 1>, scalar_prefetch = 0 : i64, scratch_operands = 0 : i64, tpu.core_type = #tpu.core_type<tc>, window_params = [{transform_indices = @transform_0, window_bounds = array<i64: 16, 64>}, {pipeline_mode = #tpu.pipeline_mode<synchronous>, transform_indices = @transform_1, window_bounds = array<i64: 64, 128>}, {pipeline_mode = #tpu.pipeline_mode<synchronous>, transform_indices = @transform_2, window_bounds = array<i64: 1, 128>}, {pipeline_mode = #tpu.pipeline_mode<synchronous>, transform_indices = @transform_3, window_bounds = array<i64: 128, 128>}, {pipeline_mode = #tpu.pipeline_mode<synchronous>, transform_indices = @transform_4, window_bounds = array<i64: 1, 128>}, {pipeline_mode = #tpu.pipeline_mode<synchronous>, transform_indices = @transform_5, window_bounds = array<i64: 128, 128>}, {pipeline_mode = #tpu.pipeline_mode<synchronous>, transform_indices = @transform_6, window_bounds = array<i64: 1, 128>}, {transform_indices = @transform_7, window_bounds = array<i64: 16, 128>}]} {
    %c0 = arith.constant 0 : index
    %c0_0 = arith.constant 0 : index
    %0 = vector.load %arg1[%c0, %c0_0] : memref<16x64xbf16, #tpu.memory_space<vmem>>, vector<16x64xbf16>
    %c0_1 = arith.constant 0 : index
    %c0_2 = arith.constant 0 : index
    %1 = vector.load %arg2[%c0_1, %c0_2] : memref<64x128xbf16, #tpu.memory_space<vmem>>, vector<64x128xbf16>
    %c0_3 = arith.constant 0 : index
    %c0_4 = arith.constant 0 : index
    %2 = vector.load %arg3[%c0_3, %c0_4] : memref<1x128xf32, #tpu.memory_space<vmem>>, vector<1x128xf32>
    %cst = arith.constant dense<0.000000e+00> : vector<16x128xf32>
    %3 = tpu.matmul %0, %1, %cst {dimension_numbers = #tpu.dot_dimension_numbers<[1], [0], [0], [1], [0, 0, 1, 1], [], []>} : vector<16x64xbf16>, vector<64x128xbf16>, vector<16x128xf32> -> vector<16x128xf32>
    %4 = vector.broadcast %2 : vector<1x128xf32> to vector<16x128xf32>
    %5 = arith.addf %3, %4 : vector<16x128xf32>
    %cst_5 = arith.constant 0.000000e+00 : f32
    %6 = vector.broadcast %cst_5 : f32 to vector<16x128xf32>
    %7 = arith.maximumf %5, %6 : vector<16x128xf32>
    %8 = arith.truncf %7 : vector<16x128xf32> to vector<16x128xbf16>
    %c0_6 = arith.constant 0 : index
    %c0_7 = arith.constant 0 : index
    %9 = vector.load %arg4[%c0_6, %c0_7] : memref<128x128xbf16, #tpu.memory_space<vmem>>, vector<128x128xbf16>
    %c0_8 = arith.constant 0 : index
    %c0_9 = arith.constant 0 : index
    %10 = vector.load %arg5[%c0_8, %c0_9] : memref<1x128xf32, #tpu.memory_space<vmem>>, vector<1x128xf32>
    %cst_10 = arith.constant dense<0.000000e+00> : vector<16x128xf32>
    %11 = tpu.matmul %8, %9, %cst_10 {dimension_numbers = #tpu.dot_dimension_numbers<[1], [0], [0], [1], [0, 0, 1, 1], [], []>} : vector<16x128xbf16>, vector<128x128xbf16>, vector<16x128xf32> -> vector<16x128xf32>
    %12 = vector.broadcast %10 : vector<1x128xf32> to vector<16x128xf32>
    %13 = arith.addf %11, %12 : vector<16x128xf32>
    %cst_11 = arith.constant 0.000000e+00 : f32
    %14 = vector.broadcast %cst_11 : f32 to vector<16x128xf32>
    %15 = arith.maximumf %13, %14 : vector<16x128xf32>
    %16 = arith.truncf %15 : vector<16x128xf32> to vector<16x128xbf16>
    %c0_12 = arith.constant 0 : index
    %c0_13 = arith.constant 0 : index
    %17 = vector.load %arg6[%c0_12, %c0_13] : memref<128x128xbf16, #tpu.memory_space<vmem>>, vector<128x128xbf16>
    %c0_14 = arith.constant 0 : index
    %c0_15 = arith.constant 0 : index
    %18 = vector.load %arg7[%c0_14, %c0_15] : memref<1x128xf32, #tpu.memory_space<vmem>>, vector<1x128xf32>
    %cst_16 = arith.constant dense<0.000000e+00> : vector<16x128xf32>
    %19 = tpu.matmul %16, %17, %cst_16 {dimension_numbers = #tpu.dot_dimension_numbers<[1], [0], [0], [1], [0, 0, 1, 1], [], []>} : vector<16x128xbf16>, vector<128x128xbf16>, vector<16x128xf32> -> vector<16x128xf32>
    %20 = vector.broadcast %18 : vector<1x128xf32> to vector<16x128xf32>
    %21 = arith.addf %19, %20 : vector<16x128xf32>
    %22 = math.tanh %21 : vector<16x128xf32>
    %cst_17 = arith.constant 1.000000e+00 : f32
    %23 = vector.broadcast %cst_17 : f32 to vector<16x128xf32>
    %24 = arith.addf %22, %23 : vector<16x128xf32>
    %cst_18 = arith.constant 1.000000e+00 : f32
    %25 = vector.broadcast %cst_18 : f32 to vector<16x128xf32>
    %26 = arith.mulf %25, %24 : vector<16x128xf32>
    %cst_19 = arith.constant -1.000000e+00 : f32
    %27 = vector.broadcast %cst_19 : f32 to vector<16x128xf32>
    %28 = arith.addf %27, %26 : vector<16x128xf32>
    %cst_20 = arith.constant 1.000000e+00 : f32
    %29 = vector.broadcast %cst_20 : f32 to vector<16x128xf32>
    %30 = arith.addf %22, %29 : vector<16x128xf32>
    %cst_21 = arith.constant 2.500000e+00 : f32
    %31 = vector.broadcast %cst_21 : f32 to vector<16x128xf32>
    %32 = arith.mulf %31, %30 : vector<16x128xf32>
    %cst_22 = arith.constant -5.000000e+00 : f32
    %33 = vector.broadcast %cst_22 : f32 to vector<16x128xf32>
    %34 = arith.addf %33, %32 : vector<16x128xf32>
    %35 = math.exp %34 : vector<16x128xf32>
    %36 = tpu.iota {dimensions = array<i32: 1>} : vector<16x128xi32>
    %c4_i32 = arith.constant 4 : i32
    %37 = vector.broadcast %c4_i32 : i32 to vector<16x128xi32>
    %38 = arith.cmpi slt, %36, %37 : vector<16x128xi32>
    %39 = arith.select %38, %28, %35 : vector<16x128xi1>, vector<16x128xf32>
    %40 = arith.truncf %39 : vector<16x128xf32> to vector<16x128xbf16>
    %c0_23 = arith.constant 0 : index
    %c0_24 = arith.constant 0 : index
    %41 = vector.load %arg8[%c0_23, %c0_24] : memref<16x128xbf16, #tpu.memory_space<vmem>>, vector<16x128xbf16>
    tpu.vector_store %arg8[%c0_23, %c0_24], %40 {strides = array<i32>} : memref<16x128xbf16, #tpu.memory_space<vmem>>, vector<16x128xbf16>,
    return
  }
  func.func @transform_0(%arg0: i32) -> (i32, i32) {
    %c0_i32 = arith.constant 0 : i32
    %c0_i32_0 = arith.constant 0 : i32
    return %arg0, %c0_i32 : i32, i32
  }
  func.func @transform_1(%arg0: i32) -> (i32, i32) {
    %c0_i32 = arith.constant 0 : i32
    %c0_i32_0 = arith.constant 0 : i32
    %c0_i32_1 = arith.constant 0 : i32
    return %c0_i32, %c0_i32_0 : i32, i32
  }
  func.func @transform_2(%arg0: i32) -> (i32, i32) {
    %c0_i32 = arith.constant 0 : i32
    %c0_i32_0 = arith.constant 0 : i32
    %c0_i32_1 = arith.constant 0 : i32
    return %c0_i32, %c0_i32_0 : i32, i32
  }
  func.func @transform_3(%arg0: i32) -> (i32, i32) {
    %c0_i32 = arith.constant 0 : i32
    %c0_i32_0 = arith.constant 0 : i32
    %c0_i32_1 = arith.constant 0 : i32
    return %c0_i32, %c0_i32_0 : i32, i32
  }
  func.func @transform_4(%arg0: i32) -> (i32, i32) {
    %c0_i32 = arith.constant 0 : i32
    %c0_i32_0 = arith.constant 0 : i32
    %c0_i32_1 = arith.constant 0 : i32
    return %c0_i32, %c0_i32_0 : i32, i32
  }
  func.func @transform_5(%arg0: i32) -> (i32, i32) {
    %c0_i32 = arith.constant 0 : i32
    %c0_i32_0 = arith.constant 0 : i32
    %c0_i32_1 = arith.constant 0 : i32
    return %c0_i32, %c0_i32_0 : i32, i32
  }
  func.func @transform_6(%arg0: i32) -> (i32, i32) {
    %c0_i32 = arith.constant 0 : i32
    %c0_i32_0 = arith.constant 0 : i32
    %c0_i32_1 = arith.constant 0 : i32
    return %c0_i32, %c0_i32_0 : i32, i32
  }
  func.func @transform_7(%arg0: i32) -> (i32, i32) {
    %c0_i32 = arith.constant 0 : i32
    %c0_i32_0 = arith.constant 0 : i32
    return %arg0, %c0_i32 : i32, i32
  }
}

module attributes {stable_mosaic.version = 11 : i64} {
  func.func @kernel(%arg0: i32, %arg1: memref<16x64xbf16, #tpu.memory_space<vmem>>, %arg2: memref<64x128xbf16, #tpu.memory_space<vmem>>, %arg3: memref<1x128xf32, #tpu.memory_space<vmem>>, %arg4: memref<128x128xbf16, #tpu.memory_space<vmem>>, %arg5: memref<1x128xf32, #tpu.memory_space<vmem>>, %arg6: memref<128x128xbf16, #tpu.memory_space<vmem>>, %arg7: memref<1x128xf32, #tpu.memory_space<vmem>>, %arg8: memref<16x128xbf16, #tpu.memory_space<vmem>>) attributes {dimension_semantics = [#tpu.dimension_semantics<parallel>], iteration_bounds = array<i64: 1>, scalar_prefetch = 0 : i64, scratch_operands = 0 : i64, tpu.core_type = #tpu.core_type<tc>, window_params = [{transform_indices = @transform_0, window_bounds = array<i64: 16, 64>}, {pipeline_mode = #tpu.pipeline_mode<synchronous>, transform_indices = @transform_1, window_bounds = array<i64: 64, 128>}, {pipeline_mode = #tpu.pipeline_mode<synchronous>, transform_indices = @transform_2, window_bounds = array<i64: 1, 128>}, {pipeline_mode = #tpu.pipeline_mode<synchronous>, transform_indices = @transform_3, window_bounds = array<i64: 128, 128>}, {pipeline_mode = #tpu.pipeline_mode<synchronous>, transform_indices = @transform_4, window_bounds = array<i64: 1, 128>}, {pipeline_mode = #tpu.pipeline_mode<synchronous>, transform_indices = @transform_5, window_bounds = array<i64: 128, 128>}, {pipeline_mode = #tpu.pipeline_mode<synchronous>, transform_indices = @transform_6, window_bounds = array<i64: 1, 128>}, {transform_indices = @transform_7, window_bounds = array<i64: 16, 128>}]} {
    %c0 = arith.constant 0 : index
    %c0_0 = arith.constant 0 : index
    %0 = vector.load %arg1[%c0, %c0_0] : memref<16x64xbf16, #tpu.memory_space<vmem>>, vector<16x64xbf16>
    %c0_1 = arith.constant 0 : index
    %c0_2 = arith.constant 0 : index
    %1 = vector.load %arg2[%c0_1, %c0_2] : memref<64x128xbf16, #tpu.memory_space<vmem>>, vector<64x128xbf16>
    %c0_3 = arith.constant 0 : index
    %c0_4 = arith.constant 0 : index
    %2 = vector.load %arg3[%c0_3, %c0_4] : memref<1x128xf32, #tpu.memory_space<vmem>>, vector<1x128xf32>
    %cst = arith.constant dense<0.000000e+00> : vector<16x128xf32>
    %3 = tpu.matmul %0, %1, %cst {dimension_numbers = #tpu.dot_dimension_numbers<[1], [0], [0], [1], [0, 0, 1, 1], [], []>} : vector<16x64xbf16>, vector<64x128xbf16>, vector<16x128xf32> -> vector<16x128xf32>
    %4 = vector.broadcast %2 : vector<1x128xf32> to vector<16x128xf32>
    %5 = arith.addf %3, %4 : vector<16x128xf32>
    %cst_5 = arith.constant 0.000000e+00 : f32
    %6 = vector.broadcast %cst_5 : f32 to vector<16x128xf32>
    %7 = arith.maximumf %5, %6 : vector<16x128xf32>
    %8 = arith.truncf %7 : vector<16x128xf32> to vector<16x128xbf16>
    %c0_6 = arith.constant 0 : index
    %c0_7 = arith.constant 0 : index
    %9 = vector.load %arg4[%c0_6, %c0_7] : memref<128x128xbf16, #tpu.memory_space<vmem>>, vector<128x128xbf16>
    %c0_8 = arith.constant 0 : index
    %c0_9 = arith.constant 0 : index
    %10 = vector.load %arg5[%c0_8, %c0_9] : memref<1x128xf32, #tpu.memory_space<vmem>>, vector<1x128xf32>
    %cst_10 = arith.constant dense<0.000000e+00> : vector<16x128xf32>
    %11 = tpu.matmul %8, %9, %cst_10 {dimension_numbers = #tpu.dot_dimension_numbers<[1], [0], [0], [1], [0, 0, 1, 1], [], []>} : vector<16x128xbf16>, vector<128x128xbf16>, vector<16x128xf32> -> vector<16x128xf32>
    %12 = vector.broadcast %10 : vector<1x128xf32> to vector<16x128xf32>
    %13 = arith.addf %11, %12 : vector<16x128xf32>
    %cst_11 = arith.constant 0.000000e+00 : f32
    %14 = vector.broadcast %cst_11 : f32 to vector<16x128xf32>
    %15 = arith.maximumf %13, %14 : vector<16x128xf32>
    %16 = arith.truncf %15 : vector<16x128xf32> to vector<16x128xbf16>
    %c0_12 = arith.constant 0 : index
    %c0_13 = arith.constant 0 : index
    %17 = vector.load %arg6[%c0_12, %c0_13] : memref<128x128xbf16, #tpu.memory_space<vmem>>, vector<128x128xbf16>
    %c0_14 = arith.constant 0 : index
    %c0_15 = arith.constant 0 : index
    %18 = vector.load %arg7[%c0_14, %c0_15] : memref<1x128xf32, #tpu.memory_space<vmem>>, vector<1x128xf32>
    %cst_16 = arith.constant dense<0.000000e+00> : vector<16x128xf32>
    %19 = tpu.matmul %16, %17, %cst_16 {dimension_numbers = #tpu.dot_dimension_numbers<[1], [0], [0], [1], [0, 0, 1, 1], [], []>} : vector<16x128xbf16>, vector<128x128xbf16>, vector<16x128xf32> -> vector<16x128xf32>
    %20 = vector.broadcast %18 : vector<1x128xf32> to vector<16x128xf32>
    %21 = arith.addf %19, %20 : vector<16x128xf32>
    %22 = math.tanh %21 : vector<16x128xf32>
    %cst_17 = arith.constant 1.000000e+00 : f32
    %23 = vector.broadcast %cst_17 : f32 to vector<16x128xf32>
    %24 = arith.addf %22, %23 : vector<16x128xf32>
    %cst_18 = arith.constant 1.000000e+00 : f32
    %25 = vector.broadcast %cst_18 : f32 to vector<16x128xf32>
    %26 = arith.mulf %25, %24 : vector<16x128xf32>
    %cst_19 = arith.constant -1.000000e+00 : f32
    %27 = vector.broadcast %cst_19 : f32 to vector<16x128xf32>
    %28 = arith.addf %27, %26 : vector<16x128xf32>
    %cst_20 = arith.constant 1.000000e+00 : f32
    %29 = vector.broadcast %cst_20 : f32 to vector<16x128xf32>
    %30 = arith.addf %22, %29 : vector<16x128xf32>
    %cst_21 = arith.constant 2.500000e+00 : f32
    %31 = vector.broadcast %cst_21 : f32 to vector<16x128xf32>
    %32 = arith.mulf %31, %30 : vector<16x128xf32>
    %cst_22 = arith.constant -5.000000e+00 : f32
    %33 = vector.broadcast %cst_22 : f32 to vector<16x128xf32>
    %34 = arith.addf %33, %32 : vector<16x128xf32>
    %35 = math.exp %34 : vector<16x128xf32>
    %36 = tpu.iota {dimensions = array<i32: 1>} : vector<16x128xi32>
    %c4_i32 = arith.constant 4 : i32
    %37 = vector.broadcast %c4_i32 : i32 to vector<16x128xi32>
    %38 = arith.cmpi slt, %36, %37 : vector<16x128xi32>
    %39 = arith.select %38, %28, %35 : vector<16x128xi1>, vector<16x128xf32>
    %40 = arith.truncf %39 : vector<16x128xf32> to vector<16x128xbf16>
    %c0_23 = arith.constant 0 : index
    %c0_24 = arith.constant 0 : index
    %41 = vector.load %arg8[%c0_23, %c0_24] : memref<16x128xbf16, #tpu.memory_space<vmem>>, vector<16x128xbf16>
    tpu.vector_store %arg8[%c0_23, %c0_24], %40 {strides = array<i32>} : memref<16x128xbf16, #tpu.memory_space<vmem>>, vector<16x128xbf16>,
    return
  }
  func.func @transform_0(%arg0: i32) -> (i32, i32) {
    %c0_i32 = arith.constant 0 : i32
    %c0_i32_0 = arith.constant 0 : i32
    return %arg0, %c0_i32 : i32, i32
  }
  func.func @transform_1(%arg0: i32) -> (i32, i32) {
    %c0_i32 = arith.constant 0 : i32
    %c0_i32_0 = arith.constant 0 : i32
    %c0_i32_1 = arith.constant 0 : i32
    return %c0_i32, %c0_i32_0 : i32, i32
  }
  func.func @transform_2(%arg0: i32) -> (i32, i32) {
    %c0_i32 = arith.constant 0 : i32
    %c0_i32_0 = arith.constant 0 : i32
    %c0_i32_1 = arith.constant 0 : i32
    return %c0_i32, %c0_i32_0 : i32, i32
  }
  func.func @transform_3(%arg0: i32) -> (i32, i32) {
    %c0_i32 = arith.constant 0 : i32
    %c0_i32_0 = arith.constant 0 : i32
    %c0_i32_1 = arith.constant 0 : i32
    return %c0_i32, %c0_i32_0 : i32, i32
  }
  func.func @transform_4(%arg0: i32) -> (i32, i32) {
    %c0_i32 = arith.constant 0 : i32
    %c0_i32_0 = arith.constant 0 : i32
    %c0_i32_1 = arith.constant 0 : i32
    return %c0_i32, %c0_i32_0 : i32, i32
  }
  func.func @transform_5(%arg0: i32) -> (i32, i32) {
    %c0_i32 = arith.constant 0 : i32
    %c0_i32_0 = arith.constant 0 : i32
    %c0_i32_1 = arith.constant 0 : i32
    return %c0_i32, %c0_i32_0 : i32, i32
  }
  func.func @transform_6(%arg0: i32) -> (i32, i32) {
    %c0_i32 = arith.constant 0 : i32
    %c0_i32_0 = arith.constant 0 : i32
    %c0_i32_1 = arith.constant 0 : i32
    return %c0_i32, %c0_i32_0 : i32, i32
  }
  func.func @transform_7(%arg0: i32) -> (i32, i32) {
    %c0_i32 = arith.constant 0 : i32
    %c0_i32_0 = arith.constant 0 : i32
    return %arg0, %c0_i32 : i32, i32
  }
}

</mosaic_0001>

<bundles_post_ra>
// kernel: tpu_custom_call.1
= control target key start
LH: loop header
LB: loop body
LE: loop exit
PB: predicated region body
PF: predicated region fallthrough
CT: control target
= control target key end

     0   :  { %12 = vsyncpa [#allocation3], 0  ;;  %s709_s0 = inlined_call_operand.hbm [shape: bf16[16,64], index: 0, kind: input, shape index: {}]   ;;  %s710_s1 = inlined_call_operand.hbm [shape: bf16[64,128], index: 1, kind: input, shape index: {}]   ;;  %s711_s2 = inlined_call_operand.vmem [shape: f32[1,128], index: 2, kind: input, shape index: {}]   ;;  %s712_s3 = inlined_call_operand.hbm [shape: bf16[128,128], index: 3, kind: input, shape index: {}]   ;;  %s713_s4 = inlined_call_operand.vmem [shape: f32[1,128], index: 4, kind: input, shape index: {}]   ;;  %s714_s5 = inlined_call_operand.hbm [shape: bf16[128,128], index: 5, kind: input, shape index: {}]   ;;  %s715_s6 = inlined_call_operand.vmem [shape: f32[1,128], index: 6, kind: input, shape index: {}]   ;;  %s716_s7 = inlined_call_operand.hbm [shape: bf16[16,128], index: 7, kind: output, shape index: {}]  }
   0x1   :  { %13 = vsyncpa [#allocation6], 0 }
   0x2   :  { %14 = vsyncpa [#allocation9], 0 }
   0x3   :  { %15 = vsyncpa [#allocation4], 0  ;;  %s33_s26 = sshll.u32 %s710_s1, 4  ;;  %s623_s27 = smov [#allocation5]   ;;  %s34_s26 = int_to_ptr.hbm [resolvable:$true] %s33_s26 }
   0x4   :  { %s35_s28 = sshll.u32 %s623_s27, 4  ;;  %s20_s8 = sshll.u32 %s709_s0, 4  ;;  %s36_s28 = int_to_ptr.vmem [resolvable:$true] %s35_s28  ;;  %s21_s8 = int_to_ptr.hbm [resolvable:$true] %s20_s8 }
   0x5   :  { %s624_s9 = smov 64   ;;  %s625_s10 = smov 4  }
   0x6   :  { %41 = dma.hbm_to_vmem [thread:$0]  %s34_s26, 512, %s36_s28, [#allocation6], %s624_s9, %s624_s9, %s625_s10  }
   0x7   :  { %s626_s11 = smov [#allocation2]   ;;  %s48_s1 = sshll.u32 %s712_s3, 4  ;;  %s49_s1 = int_to_ptr.hbm [resolvable:$true] %s48_s1 }
   0x8   :  { %s22_s12 = sshll.u32 %s626_s11, 4  ;;  %s63_s16 = sshll.u32 %s714_s5, 4  ;;  %s23_s12 = int_to_ptr.vmem [resolvable:$true] %s22_s12  ;;  %s64_s16 = int_to_ptr.hbm [resolvable:$true] %s63_s16 }
   0x9   :  { %28 = dma.hbm_to_vmem [thread:$0]  %s21_s8, 128, %s23_s12, [#allocation3], %s624_s9, %s624_s9, %s625_s10  }
   0xa   :  { %s627_s17 = smov [#allocation7]   ;;  %s628_s19 = smov [#allocation8]  }
   0xb   :  { %s50_s18 = sshll.u32 %s627_s17, 4  ;;  %s65_s3 = sshll.u32 %s628_s19, 4  ;;  %s51_s18 = int_to_ptr.vmem [resolvable:$true] %s50_s18  ;;  %s66_s3 = int_to_ptr.vmem [resolvable:$true] %s65_s3 }
   0xc   :  { %56 = dma.hbm_to_vmem [thread:$0]  %s49_s1, 1024, %s51_s18, [#allocation6], %s624_s9, %s624_s9, %s625_s10  }
   0xd   :  { %71 = dma.hbm_to_vmem [thread:$0]  %s64_s16, 1024, %s66_s3, [#allocation9], %s624_s9, %s624_s9, %s625_s10  }
   0xe   :  { %615 = dma.done.wait [#allocation3], 128  }
   0xf   :  { %616 = vsyncadd [#allocation3], 4294967168 }
  0x10   :  { %617 = dma.done.wait [#allocation6], 1536  }
  0x11   :  { %618 = vsyncadd [#allocation6], 4294965760 }
  0x12   :  { %619 = dma.done.wait [#allocation9], 1024  }
  0x13   :  { %620 = vsyncadd [#allocation9], 4294966272  ;;  %v455_v0 = vld [vmem:[#allocation5 + $0x18] sm:$0xff]  ;;  %v454_v2 = vld [vmem:[#allocation5 + $0x10] sm:$0xff]  ;;  %vm134_vm0 = vcmask 523264   ;;  %v336_v51 = vlaneseq  ;;  %s351_s26 = sshll.u32 %s716_s7, 4  ;;  %s352_s26 = int_to_ptr.hbm [resolvable:$true] %s351_s26 }
  0x14   :  { %v463_v1 = vld [vmem:[#allocation7 + $0x38] sm:$0xff]  ;;  %142 = vmatpush.bf16.msra.mxu0 %v455_v0  ;;  %v462_v3 = vld [vmem:[#allocation7 + $0x30] sm:$0xff]  ;;  %v453_v4 = vld [vmem:[#allocation5 + $0x8] sm:$0xff] }
  0x15   :  { %223 = vmatpush.bf16.msra.mxu1 %v463_v1  ;;  %v461_v5 = vld [vmem:[#allocation7 + $0x28] sm:$0xff]  ;;  %v452_v6 = vld [vmem:[#allocation5] sm:$0xff]  ;;  %v451_v8 = vld [vmem:[#allocation2] sm:$0xff]  ;;  %v337_v53 = vand.u32 127, %v336_v51 }
  0x16   :  { %v460_v7 = vld [vmem:[#allocation7 + $0x20] sm:$0xff]  ;;  %v459_v9 = vld [vmem:[#allocation7 + $0x18] sm:$0xff]  ;;  %v458_v10 = vld [vmem:[#allocation7 + $0x10] sm:$0xff] }
  0x17   :  { %v457_v11 = vld [vmem:[#allocation7 + $0x8] sm:$0xff]  ;;  %v456_v12 = vld [vmem:[#allocation7] sm:$0xff]  ;;  %v471_v13 = vld [vmem:[#allocation8 + $0x38] sm:$0xff]  ;;  %vm338_vm1 = vcmp.lt.s32.totalorder %v337_v53, 4 }
  0x18   :  { %143 = vmatpush.bf16.msra.mxu0 %v454_v2  ;;  %308 = vmatpush.bf16.msra.mxu2 %v471_v13  ;;  %v470_v14 = vld [vmem:[#allocation8 + $0x30] sm:$0xff]  ;;  %v469_v15 = vld [vmem:[#allocation8 + $0x28] sm:$0xff]  ;;  %v468_v16 = vld [vmem:[#allocation8 + $0x20] sm:$0xff] }
  0x19   :  { %224 = vmatpush.bf16.msra.mxu1 %v462_v3  ;;  %v484_v18 = vld [vmem:[%s711_s2] ss:$0 sm:$0xff]  ;;  %v466_v26 = vld [vmem:[#allocation8 + $0x10] sm:$0xff]  ;;  %v465_v27 = vld [vmem:[#allocation8 + $0x8] sm:$0xff] }
  0x1a   :  { %v467_v25 = vld [vmem:[#allocation8 + $0x18] sm:$0xff]  ;;  %v464_v28 = vld [vmem:[#allocation8] sm:$0xff] }
  0x1b   :  { %v485_v30 = vld [vmem:[%s713_s4] ss:$0 sm:$0xff]  ;;  %s629_s4 = smov [#allocation10]  }
  0x1c   :  { %144 = vmatpush.bf16.msra.mxu0 %v453_v4  ;;  %309 = vmatpush.bf16.msra.mxu2 %v470_v14  ;;  %v486_v37 = vld [vmem:[%s715_s6] ss:$0 sm:$0xff]  ;;  %s349_s6 = sshll.u32 %s629_s4, 4  ;;  %s350_s6 = int_to_ptr.vmem [resolvable:$true] %s349_s6 }
  0x1d   :  { %225 = vmatpush.bf16.msra.mxu1 %v461_v5 }
  0x20   :  { %145 = vmatpush.bf16.msra.mxu0 %v452_v6  ;;  %310 = vmatpush.bf16.msra.mxu2 %v469_v15 }
  0x21   :  { %226 = vmatpush.bf16.msra.mxu1 %v460_v7 }
  0x23   :  { %386 = vmatmul.msk.bf16.vlgmr.msra.gmra.mxu0 %vm134_vm0, %v451_v8 }
  0x24   :  { %311 = vmatpush.bf16.msra.mxu2 %v468_v16 }
  0x25   :  { %227 = vmatpush.bf16.msra.mxu1 %v459_v9 }
  0x28   :  { %312 = vmatpush.bf16.msra.mxu2 %v467_v25 }
  0x29   :  { %228 = vmatpush.bf16.msra.mxu1 %v458_v10 }
  0x2c   :  { %313 = vmatpush.bf16.msra.mxu2 %v466_v26 }
  0x2d   :  { %229 = vmatpush.bf16.msra.mxu1 %v457_v11 }
  0x30   :  { %314 = vmatpush.bf16.msra.mxu2 %v465_v27 }
  0x31   :  { %230 = vmatpush.bf16.msra.mxu1 %v456_v12 }
  0x34   :  { %315 = vmatpush.bf16.msra.mxu2 %v464_v28 }
  0xa0   :  { %v147_v17 = vpop.f32.mrf.mxu0 }
  0xa1   :  { %v148_v19 = vadd.f32 %v484_v18, %v147_v17 }
  0xa3   :  { %v152_v22 = vmax.f32 %v148_v19, 0.0 }
  0xa8   :  { %v149_v20 = vpop.f32.mrf.mxu0 }
  0xa9   :  { %v150_v21 = vadd.f32 %v484_v18, %v149_v20 }
  0xab   :  { %v153_v23 = vmax.f32 %v150_v21, 0.0 }
  0xad   :  { %v154_v24 = vpack.c.bf16 %v153_v23, %v152_v22 }
  0xaf   :  { %231 = vmatmul.bf16.vlgmr.msra.gmra.mxu1 %v154_v24 }
 0x12c   :  { %v232_v29 = vpop.f32.mrf.mxu1 }
 0x12d   :  { %v233_v31 = vadd.f32 %v485_v30, %v232_v29 }
 0x12f   :  { %v237_v34 = vmax.f32 %v233_v31, 0.0 }
 0x134   :  { %v234_v32 = vpop.f32.mrf.mxu1 }
 0x135   :  { %v235_v33 = vadd.f32 %v485_v30, %v234_v32 }
 0x137   :  { %v238_v35 = vmax.f32 %v235_v33, 0.0 }
 0x139   :  { %v239_v36 = vpack.c.bf16 %v238_v35, %v237_v34 }
 0x13b   :  { %316 = vmatmul.bf16.vlgmr.msra.gmra.mxu2 %v239_v36 }
 0x1be   :  { %v317_v38 = vpop.f32.mrf.mxu2 }
 0x1bf   :  { %v318_v39 = vadd.f32 %v486_v37, %v317_v38 }
 0x1c1   :  { %487 = vtanh.f32 %v318_v39 }
 0x1c6   :  { %v319_v40 = vpop.f32.mrf.mxu2 }
 0x1c7   :  { %v488_v41 = vpop.eup %487  ;;  %v320_v42 = vadd.f32 %v486_v37, %v319_v40 }
 0x1c8   :  { %v324_v43 = vadd.f32 1.0, %v488_v41 }
 0x1c9   :  { %489 = vtanh.f32 %v320_v42 }
 0x1ca   :  { %v328_v44 = vmul.f32 2.5, %v324_v43  ;;  %v326_v55 = vadd.f32 -1.0, %v324_v43 }
 0x1cc   :  { %v330_v45 = vadd.f32 -5.0, %v328_v44 }
 0x1ce   :  { %v332_v48 = vmul.f32 1.442695, %v330_v45 }
 0x1cf   :  { %v490_v46 = vpop.eup %489 }
 0x1d0   :  { %v325_v47 = vadd.f32 1.0, %v490_v46  ;;  %491 = vpow2.f32 %v332_v48 }
 0x1d2   :  { %v329_v49 = vmul.f32 2.5, %v325_v47  ;;  %v327_v56 = vadd.f32 -1.0, %v325_v47 }
 0x1d4   :  { %v331_v50 = vadd.f32 -5.0, %v329_v49 }
 0x1d6   :  { %v334_v52 = vmul.f32 1.442695, %v331_v50  ;;  %v492_v54 = vpop.eup %491 }
 0x1d7   :  { %v339_v58 = vsel %vm338_vm1, %v326_v55, %v492_v54 }
 0x1d8   :  { %493 = vpow2.f32 %v334_v52 }
 0x1de   :  { %v494_v57 = vpop.eup %493 }
 0x1df   :  { %v340_v59 = vsel %vm338_vm1, %v327_v56, %v494_v57 }
 0x1e0   :  { %v475_v60 = vpack.c.bf16 %v340_v59, %v339_v58 }
 0x1e2   :  { %476 = vst [vmem:[#allocation10] sm:$0xff] %v475_v60  }
 0x1e3   :  { %357 = dma.vmem_to_hbm [thread:$0]  %s350_s6, 128, %s352_s26, [#allocation4], %s624_s9, %s624_s9, %s625_s10  }
 0x1e4   :  { %621 = dma.done.wait [#allocation4], 128  }
 0x1e5   :  { %622 = vsyncadd [#allocation4], 4294967168 }
 0x1e6   :  { %362 = vsyncpa [#allocation3], 1 }
 0x1e7   :  { %363 = vsyncpa [#allocation6], 1 }
 0x1e8   :  { %364 = vsyncpa [#allocation9], 1 }
 0x1e9   :  { %365 = vsyncpa [#allocation4], 1 }

// kernel: tpu_custom_call.1
= control target key start
LH: loop header
LB: loop body
LE: loop exit
PB: predicated region body
PF: predicated region fallthrough
CT: control target
= control target key end

     0   :  { %12 = vsyncpa [#allocation3], 0  ;;  %s709_s0 = inlined_call_operand.hbm [shape: bf16[16,64], index: 0, kind: input, shape index: {}]   ;;  %s710_s1 = inlined_call_operand.hbm [shape: bf16[64,128], index: 1, kind: input, shape index: {}]   ;;  %s711_s2 = inlined_call_operand.vmem [shape: f32[1,128], index: 2, kind: input, shape index: {}]   ;;  %s712_s3 = inlined_call_operand.hbm [shape: bf16[128,128], index: 3, kind: input, shape index: {}]   ;;  %s713_s4 = inlined_call_operand.vmem [shape: f32[1,128], index: 4, kind: input, shape index: {}]   ;;  %s714_s5 = inlined_call_operand.hbm [shape: bf16[128,128], index: 5, kind: input, shape index: {}]   ;;  %s715_s6 = inlined_call_operand.vmem [shape: f32[1,128], index: 6, kind: input, shape index: {}]   ;;  %s716_s7 = inlined_call_operand.hbm [shape: bf16[16,128], index: 7, kind: output, shape index: {}]  }
   0x1   :  { %13 = vsyncpa [#allocation6], 0 }
   0x2   :  { %14 = vsyncpa [#allocation9], 0 }
   0x3   :  { %15 = vsyncpa [#allocation4], 0  ;;  %s33_s26 = sshll.u32 %s710_s1, 4  ;;  %s623_s27 = smov [#allocation5]   ;;  %s34_s26 = int_to_ptr.hbm [resolvable:$true] %s33_s26 }
   0x4   :  { %s35_s28 = sshll.u32 %s623_s27, 4  ;;  %s20_s8 = sshll.u32 %s709_s0, 4  ;;  %s36_s28 = int_to_ptr.vmem [resolvable:$true] %s35_s28  ;;  %s21_s8 = int_to_ptr.hbm [resolvable:$true] %s20_s8 }
   0x5   :  { %s624_s9 = smov 64   ;;  %s625_s10 = smov 4  }
   0x6   :  { %41 = dma.hbm_to_vmem [thread:$0]  %s34_s26, 512, %s36_s28, [#allocation6], %s624_s9, %s624_s9, %s625_s10  }
   0x7   :  { %s626_s11 = smov [#allocation2]   ;;  %s48_s1 = sshll.u32 %s712_s3, 4  ;;  %s49_s1 = int_to_ptr.hbm [resolvable:$true] %s48_s1 }
   0x8   :  { %s22_s12 = sshll.u32 %s626_s11, 4  ;;  %s63_s16 = sshll.u32 %s714_s5, 4  ;;  %s23_s12 = int_to_ptr.vmem [resolvable:$true] %s22_s12  ;;  %s64_s16 = int_to_ptr.hbm [resolvable:$true] %s63_s16 }
   0x9   :  { %28 = dma.hbm_to_vmem [thread:$0]  %s21_s8, 128, %s23_s12, [#allocation3], %s624_s9, %s624_s9, %s625_s10  }
   0xa   :  { %s627_s17 = smov [#allocation7]   ;;  %s628_s19 = smov [#allocation8]  }
   0xb   :  { %s50_s18 = sshll.u32 %s627_s17, 4  ;;  %s65_s3 = sshll.u32 %s628_s19, 4  ;;  %s51_s18 = int_to_ptr.vmem [resolvable:$true] %s50_s18  ;;  %s66_s3 = int_to_ptr.vmem [resolvable:$true] %s65_s3 }
   0xc   :  { %56 = dma.hbm_to_vmem [thread:$0]  %s49_s1, 1024, %s51_s18, [#allocation6], %s624_s9, %s624_s9, %s625_s10  }
   0xd   :  { %71 = dma.hbm_to_vmem [thread:$0]  %s64_s16, 1024, %s66_s3, [#allocation9], %s624_s9, %s624_s9, %s625_s10  }
   0xe   :  { %615 = dma.done.wait [#allocation3], 128  }
   0xf   :  { %616 = vsyncadd [#allocation3], 4294967168 }
  0x10   :  { %617 = dma.done.wait [#allocation6], 1536  }
  0x11   :  { %618 = vsyncadd [#allocation6], 4294965760 }
  0x12   :  { %619 = dma.done.wait [#allocation9], 1024  }
  0x13   :  { %620 = vsyncadd [#allocation9], 4294966272  ;;  %v455_v0 = vld [vmem:[#allocation5 + $0x18] sm:$0xff]  ;;  %v454_v2 = vld [vmem:[#allocation5 + $0x10] sm:$0xff]  ;;  %vm134_vm0 = vcmask 523264   ;;  %v336_v51 = vlaneseq  ;;  %s351_s26 = sshll.u32 %s716_s7, 4  ;;  %s352_s26 = int_to_ptr.hbm [resolvable:$true] %s351_s26 }
  0x14   :  { %v463_v1 = vld [vmem:[#allocation7 + $0x38] sm:$0xff]  ;;  %142 = vmatpush.bf16.msra.mxu0 %v455_v0  ;;  %v462_v3 = vld [vmem:[#allocation7 + $0x30] sm:$0xff]  ;;  %v453_v4 = vld [vmem:[#allocation5 + $0x8] sm:$0xff] }
  0x15   :  { %223 = vmatpush.bf16.msra.mxu1 %v463_v1  ;;  %v461_v5 = vld [vmem:[#allocation7 + $0x28] sm:$0xff]  ;;  %v452_v6 = vld [vmem:[#allocation5] sm:$0xff]  ;;  %v451_v8 = vld [vmem:[#allocation2] sm:$0xff]  ;;  %v337_v53 = vand.u32 127, %v336_v51 }
  0x16   :  { %v460_v7 = vld [vmem:[#allocation7 + $0x20] sm:$0xff]  ;;  %v459_v9 = vld [vmem:[#allocation7 + $0x18] sm:$0xff]  ;;  %v458_v10 = vld [vmem:[#allocation7 + $0x10] sm:$0xff] }
  0x17   :  { %v457_v11 = vld [vmem:[#allocation7 + $0x8] sm:$0xff]  ;;  %v456_v12 = vld [vmem:[#allocation7] sm:$0xff]  ;;  %v471_v13 = vld [vmem:[#allocation8 + $0x38] sm:$0xff]  ;;  %vm338_vm1 = vcmp.lt.s32.totalorder %v337_v53, 4 }
  0x18   :  { %143 = vmatpush.bf16.msra.mxu0 %v454_v2  ;;  %308 = vmatpush.bf16.msra.mxu2 %v471_v13  ;;  %v470_v14 = vld [vmem:[#allocation8 + $0x30] sm:$0xff]  ;;  %v469_v15 = vld [vmem:[#allocation8 + $0x28] sm:$0xff]  ;;  %v468_v16 = vld [vmem:[#allocation8 + $0x20] sm:$0xff] }
  0x19   :  { %224 = vmatpush.bf16.msra.mxu1 %v462_v3  ;;  %v484_v18 = vld [vmem:[%s711_s2] ss:$0 sm:$0xff]  ;;  %v466_v26 = vld [vmem:[#allocation8 + $0x10] sm:$0xff]  ;;  %v465_v27 = vld [vmem:[#allocation8 + $0x8] sm:$0xff] }
  0x1a   :  { %v467_v25 = vld [vmem:[#allocation8 + $0x18] sm:$0xff]  ;;  %v464_v28 = vld [vmem:[#allocation8] sm:$0xff] }
  0x1b   :  { %v485_v30 = vld [vmem:[%s713_s4] ss:$0 sm:$0xff]  ;;  %s629_s4 = smov [#allocation10]  }
  0x1c   :  { %144 = vmatpush.bf16.msra.mxu0 %v453_v4  ;;  %309 = vmatpush.bf16.msra.mxu2 %v470_v14  ;;  %v486_v37 = vld [vmem:[%s715_s6] ss:$0 sm:$0xff]  ;;  %s349_s6 = sshll.u32 %s629_s4, 4  ;;  %s350_s6 = int_to_ptr.vmem [resolvable:$true] %s349_s6 }
  0x1d   :  { %225 = vmatpush.bf16.msra.mxu1 %v461_v5 }
  0x20   :  { %145 = vmatpush.bf16.msra.mxu0 %v452_v6  ;;  %310 = vmatpush.bf16.msra.mxu2 %v469_v15 }
  0x21   :  { %226 = vmatpush.bf16.msra.mxu1 %v460_v7 }
  0x23   :  { %386 = vmatmul.msk.bf16.vlgmr.msra.gmra.mxu0 %vm134_vm0, %v451_v8 }
  0x24   :  { %311 = vmatpush.bf16.msra.mxu2 %v468_v16 }
  0x25   :  { %227 = vmatpush.bf16.msra.mxu1 %v459_v9 }
  0x28   :  { %312 = vmatpush.bf16.msra.mxu2 %v467_v25 }
  0x29   :  { %228 = vmatpush.bf16.msra.mxu1 %v458_v10 }
  0x2c   :  { %313 = vmatpush.bf16.msra.mxu2 %v466_v26 }
  0x2d   :  { %229 = vmatpush.bf16.msra.mxu1 %v457_v11 }
  0x30   :  { %314 = vmatpush.bf16.msra.mxu2 %v465_v27 }
  0x31   :  { %230 = vmatpush.bf16.msra.mxu1 %v456_v12 }
  0x34   :  { %315 = vmatpush.bf16.msra.mxu2 %v464_v28 }
  0xa0   :  { %v147_v17 = vpop.f32.mrf.mxu0 }
  0xa1   :  { %v148_v19 = vadd.f32 %v484_v18, %v147_v17 }
  0xa3   :  { %v152_v22 = vmax.f32 %v148_v19, 0.0 }
  0xa8   :  { %v149_v20 = vpop.f32.mrf.mxu0 }
  0xa9   :  { %v150_v21 = vadd.f32 %v484_v18, %v149_v20 }
  0xab   :  { %v153_v23 = vmax.f32 %v150_v21, 0.0 }
  0xad   :  { %v154_v24 = vpack.c.bf16 %v153_v23, %v152_v22 }
  0xaf   :  { %231 = vmatmul.bf16.vlgmr.msra.gmra.mxu1 %v154_v24 }
 0x12c   :  { %v232_v29 = vpop.f32.mrf.mxu1 }
 0x12d   :  { %v233_v31 = vadd.f32 %v485_v30, %v232_v29 }
 0x12f   :  { %v237_v34 = vmax.f32 %v233_v31, 0.0 }
 0x134   :  { %v234_v32 = vpop.f32.mrf.mxu1 }
 0x135   :  { %v235_v33 = vadd.f32 %v485_v30, %v234_v32 }
 0x137   :  { %v238_v35 = vmax.f32 %v235_v33, 0.0 }
 0x139   :  { %v239_v36 = vpack.c.bf16 %v238_v35, %v237_v34 }
 0x13b   :  { %316 = vmatmul.bf16.vlgmr.msra.gmra.mxu2 %v239_v36 }
 0x1be   :  { %v317_v38 = vpop.f32.mrf.mxu2 }
 0x1bf   :  { %v318_v39 = vadd.f32 %v486_v37, %v317_v38 }
 0x1c1   :  { %487 = vtanh.f32 %v318_v39 }
 0x1c6   :  { %v319_v40 = vpop.f32.mrf.mxu2 }
 0x1c7   :  { %v488_v41 = vpop.eup %487  ;;  %v320_v42 = vadd.f32 %v486_v37, %v319_v40 }
 0x1c8   :  { %v324_v43 = vadd.f32 1.0, %v488_v41 }
 0x1c9   :  { %489 = vtanh.f32 %v320_v42 }
 0x1ca   :  { %v328_v44 = vmul.f32 2.5, %v324_v43  ;;  %v326_v55 = vadd.f32 -1.0, %v324_v43 }
 0x1cc   :  { %v330_v45 = vadd.f32 -5.0, %v328_v44 }
 0x1ce   :  { %v332_v48 = vmul.f32 1.442695, %v330_v45 }
 0x1cf   :  { %v490_v46 = vpop.eup %489 }
 0x1d0   :  { %v325_v47 = vadd.f32 1.0, %v490_v46  ;;  %491 = vpow2.f32 %v332_v48 }
 0x1d2   :  { %v329_v49 = vmul.f32 2.5, %v325_v47  ;;  %v327_v56 = vadd.f32 -1.0, %v325_v47 }
 0x1d4   :  { %v331_v50 = vadd.f32 -5.0, %v329_v49 }
 0x1d6   :  { %v334_v52 = vmul.f32 1.442695, %v331_v50  ;;  %v492_v54 = vpop.eup %491 }
 0x1d7   :  { %v339_v58 = vsel %vm338_vm1, %v326_v55, %v492_v54 }
 0x1d8   :  { %493 = vpow2.f32 %v334_v52 }
 0x1de   :  { %v494_v57 = vpop.eup %493 }
 0x1df   :  { %v340_v59 = vsel %vm338_vm1, %v327_v56, %v494_v57 }
 0x1e0   :  { %v475_v60 = vpack.c.bf16 %v340_v59, %v339_v58 }
 0x1e2   :  { %476 = vst [vmem:[#allocation10] sm:$0xff] %v475_v60  }
 0x1e3   :  { %357 = dma.vmem_to_hbm [thread:$0]  %s350_s6, 128, %s352_s26, [#allocation4], %s624_s9, %s624_s9, %s625_s10  }
 0x1e4   :  { %621 = dma.done.wait [#allocation4], 128  }
 0x1e5   :  { %622 = vsyncadd [#allocation4], 4294967168 }
 0x1e6   :  { %362 = vsyncpa [#allocation3], 1 }
 0x1e7   :  { %363 = vsyncpa [#allocation6], 1 }
 0x1e8   :  { %364 = vsyncpa [#allocation9], 1 }
 0x1e9   :  { %365 = vsyncpa [#allocation4], 1 }

</bundles_post_ra>
